<compile_context>
chip_gen: v5e
topology: v5e:2x2
jax: 0.10.0
libtpu: 0.0.40
codegen_flags: <defaults>
</compile_context>

<pallas_src>
import functools

import jax
import jax.numpy as jnp
from jax.experimental import pallas as pl
from jax.experimental.pallas import tpu as pltpu


def _round_up(x, m):
    return ((x + m - 1) // m) * m


def _vmem_capacity_bytes():
    try:
        return int(pltpu.get_tpu_info().vmem_capacity_bytes)
    except Exception:  # conservative fallback = v7x per-TC VMEM
        return 64 * 1024 * 1024


def _select_tile_m(M, tile_m, Kp, Np, in_bytes, out_bytes, vmem_budget):
    """Largest row tile that keeps the double-buffered working set within
    `vmem_budget`, respects `tile_m`, and leaves >= 2 grid steps when there is
    enough work (so both v7x TensorCores get row blocks)."""
    if M <= 8:
        return M                                        # block == full dim is legal
    resident = 2 * Kp * Np * in_bytes + 2 * 8 * Np * 4  # weight + bias buffers
    per_row = 2 * (Kp * in_bytes + Np * out_bytes)      # double-buffered in + out
    cap = max(8, (vmem_budget - resident) // per_row)
    tm = max(8, (min(tile_m, cap) // 8) * 8)
    if M >= 16:
        tm = min(tm, _round_up(pl.cdiv(M, 2), 8))       # keep grid length >= 2
    return int(min(tm, _round_up(M, 8)))


def _patch_embed_kernel(patches_ref, w_ref, b_ref, o_ref):
    # patches_ref: (TM, Kp); w_ref: (Kp, Np); b_ref: (1, Np) f32; o_ref: (TM, Np)
    acc = jnp.dot(patches_ref[...], w_ref[...], preferred_element_type=jnp.float32)
    o_ref[...] = (acc + b_ref[...]).astype(o_ref.dtype)


def prepare_patch_embed_params(weight, bias, *, compute_dtype=jnp.bfloat16):
    """One-time weight prep (hoist out of the per-forward path and cache):
    (E, C, p, p) conv weight -> (Kp, Np) projection matrix and (1, Np) f32
    bias, with K and E zero-padded to multiples of 128."""
    E, C, p, _ = weight.shape
    K = C * p * p
    Kp = _round_up(K, 128)
    Np = _round_up(E, 128)
    w_mat = weight.reshape(E, K).T.astype(compute_dtype)
    w_mat = jnp.pad(w_mat, ((0, Kp - K), (0, Np - E)))
    b_mat = jnp.pad(bias.astype(jnp.float32).reshape(1, E), ((0, 0), (0, Np - E)))
    return w_mat, b_mat


def patch_embed(x, w_mat, b_mat, patch_size, embed_dim, *,
                out_dtype=None, tile_m=1024):
    """x: (B, C, H, W); (w_mat, b_mat) from prepare_patch_embed_params.
    Returns (B, n_patches, embed_dim), matching Conv2d(stride=kernel=p) +
    flatten(2) + transpose(1, 2)."""
    B, C, H, W = x.shape
    p = patch_size
    nh, nw = H // p, W // p
    if nh == 0 or nw == 0:
        raise ValueError("image smaller than one patch")
    n_patches = nh * nw
    K = C * p * p
    Kp, Np = w_mat.shape
    assert Kp >= K and Np >= embed_dim
    compute_dtype = w_mat.dtype
    if out_dtype is None:
        out_dtype = x.dtype

    # Conv2d(stride=p, VALID) silently drops a trailing remainder: crop to match.
    x = x[:, :, : nh * p, : nw * p]

    # --- im2col (one XLA copy; allow_input_fusion lets XLA fold it into the call)
    # (B, C, nh, p, nw, p) -> (B, nh, nw, C, p, p) -> (M, K); zero-pad K -> Kp;
    # cast to the MXU operand dtype. Pad + cast sit in the same fusion as the
    # transpose so activations cross HBM once here, not three times.
    patches = x.reshape(B, C, nh, p, nw, p)
    patches = patches.transpose(0, 2, 4, 1, 3, 5).reshape(B * n_patches, K)
    if Kp != K:
        patches = jnp.pad(patches, ((0, 0), (0, Kp - K)))
    patches = patches.astype(compute_dtype)

    M = B * n_patches
    in_bytes = jnp.dtype(compute_dtype).itemsize
    out_bytes = jnp.dtype(out_dtype).itemsize

    vmem_budget = max(16 * 1024 * 1024, (_vmem_capacity_bytes() * 3) // 4)
    TM = _select_tile_m(M, tile_m, Kp, Np, in_bytes, out_bytes, vmem_budget)
    grid = (pl.cdiv(M, TM),)  # ragged last block: masked loads, OOB stores dropped

    working_set = (2 * TM * Kp * in_bytes + 2 * Kp * Np * in_bytes
                   + 2 * TM * Np * out_bytes + 2 * 8 * Np * 4)
    vmem_limit = int(working_set + 8 * 1024 * 1024)  # working set + slack

    bytes_accessed = (M * Kp * in_bytes + Kp * Np * in_bytes + Np * 4
                      + M * Np * out_bytes)

    out = pl.pallas_call(
        _patch_embed_kernel,
        out_shape=jax.ShapeDtypeStruct((M, Np), out_dtype),
        grid=grid,
        in_specs=[
            pl.BlockSpec((TM, Kp), lambda i: (i, 0)),   # row tile, double-buffered
            pl.BlockSpec((Kp, Np), lambda i: (0, 0)),   # resident projection matrix
            pl.BlockSpec((1, Np), lambda i: (0, 0)),    # resident bias
        ],
        out_specs=pl.BlockSpec((TM, Np), lambda i: (i, 0)),
        compiler_params=pltpu.CompilerParams(
            dimension_semantics=("parallel",),          # megacore split on v7x
            vmem_limit_bytes=vmem_limit,
            allow_input_fusion=[True, False, False],    # fuse im2col into input 0
        ),
        cost_estimate=pl.CostEstimate(
            flops=2 * M * Kp * Np,
            transcendentals=0,
            bytes_accessed=bytes_accessed,
        ),
    )(patches, w_mat, b_mat)

    # Un-pad the embedding dim (no-op when embed_dim % 128 == 0; consumers that
    # can work on the padded width should defer this slice).
    return out[:, :embed_dim].reshape(B, n_patches, embed_dim)


def reference_patch_embed(x, weight, bias, patch_size):
    """Pure-JAX reference matching nn.Conv2d(stride=kernel=patch) + flatten + transpose."""
    y = jax.lax.conv_general_dilated(
        x, weight,
        window_strides=(patch_size, patch_size),
        padding="VALID",
        dimension_numbers=("NCHW", "OIHW", "NCHW"),
    ) + bias.reshape(1, -1, 1, 1)
    B, E, nh, nw = y.shape
    return y.reshape(B, E, nh * nw).transpose(0, 2, 1)


if __name__ == "__main__":
    batch, in_chans, img_size, patch_size, embed_dim = 2, 4, 16, 4, 32

    key = jax.random.PRNGKey(0)
    kx, kw, kb = jax.random.split(key, 3)

    x = jax.random.normal(kx, (batch, in_chans, img_size, img_size), dtype=jnp.float32)

    # Deterministic "Conv2d-like" parameter init (uniform in +/- 1/sqrt(fan_in)).
    fan_in = in_chans * patch_size * patch_size
    bound = 1.0 / (fan_in ** 0.5)
    weight = jax.random.uniform(
        kw, (embed_dim, in_chans, patch_size, patch_size),
        minval=-bound, maxval=bound, dtype=jnp.float32)
    bias = jax.random.uniform(kb, (embed_dim,), minval=-bound, maxval=bound,
                              dtype=jnp.float32)

    n_patches = (img_size // patch_size) ** 2
    ref = reference_patch_embed(x, weight, bias, patch_size)

    # Weight preprocessing is hoisted out of the forward path (done once).
    w_f32, b_f32 = prepare_patch_embed_params(weight, bias, compute_dtype=jnp.float32)
    w_bf16, b_bf16 = prepare_patch_embed_params(weight, bias)  # bf16 default

    def run(x_, w_, b_, tile_m=1024):
        fn = jax.jit(functools.partial(
            patch_embed, patch_size=patch_size, embed_dim=embed_dim, tile_m=tile_m))
        return jax.block_until_ready(fn(x_, w_, b_))

    # 1) Exact-numerics path (f32 MXU operands).
    out_f32 = run(x, w_f32, b_f32)
    assert out_f32.shape == (batch, n_patches, embed_dim), out_f32.shape
    assert jnp.allclose(out_f32, ref, atol=1e-4, rtol=1e-4), \
        float(jnp.max(jnp.abs(out_f32 - ref)))

    # 2) Default bf16-operand path (f32 accumulate) — relaxed tolerance vs f32 conv.
    out_bf16 = run(x, w_bf16, b_bf16)
    assert jnp.allclose(out_bf16, ref, atol=3e-2, rtol=3e-2), \
        float(jnp.max(jnp.abs(out_bf16 - ref)))

    # 3) Ragged-M multi-block path: 20x20 image -> 25 patches/img, M=50 rows,
    #    TM=16 -> grid of 4 with a 2-row ragged last block (no jnp.pad copy).
    x2 = jax.random.normal(jax.random.PRNGKey(1), (batch, in_chans, 20, 20),
                           dtype=jnp.float32)
    ref2 = reference_patch_embed(x2, weight, bias, patch_size)
    out2 = run(x2, w_f32, b_f32, tile_m=16)
    assert out2.shape == ref2.shape
    assert jnp.allclose(out2, ref2, atol=1e-4, rtol=1e-4)

    # 4) Non-multiple spatial size: Conv2d VALID drops the remainder; we crop.
    x3 = jax.random.normal(jax.random.PRNGKey(2), (batch, in_chans, 18, 18),
                           dtype=jnp.float32)
    ref3 = reference_patch_embed(x3, weight, bias, patch_size)
    out3 = run(x3, w_f32, b_f32)
    assert out3.shape == ref3.shape
    assert jnp.allclose(out3, ref3, atol=1e-4, rtol=1e-4)

    print("KERNEL_OK")
</pallas_src>

<mosaic_0001>
module attributes {stable_mosaic.version = 11 : i64} {
  func.func @_patch_embed_kernel(%arg0: i32, %arg1: memref<16x128xf32, #tpu.memory_space<vmem>>, %arg2: memref<128x128xf32, #tpu.memory_space<vmem>>, %arg3: memref<1x128xf32, #tpu.memory_space<vmem>>, %arg4: memref<16x128xf32, #tpu.memory_space<vmem>>) attributes {dimension_semantics = [#tpu.dimension_semantics<parallel>], iteration_bounds = array<i64: 2>, scalar_prefetch = 0 : i64, scratch_operands = 0 : i64, tpu.core_type = #tpu.core_type<tc>, window_params = [{transform_indices = @transform_0, window_bounds = array<i64: 16, 128>}, {pipeline_mode = #tpu.pipeline_mode<synchronous>, transform_indices = @transform_1, window_bounds = array<i64: 128, 128>}, {pipeline_mode = #tpu.pipeline_mode<synchronous>, transform_indices = @transform_2, window_bounds = array<i64: 1, 128>}, {transform_indices = @transform_3, window_bounds = array<i64: 16, 128>}]} {
    %c0 = arith.constant 0 : index
    %c0_0 = arith.constant 0 : index
    %0 = vector.load %arg1[%c0, %c0_0] : memref<16x128xf32, #tpu.memory_space<vmem>>, vector<16x128xf32>
    %c0_1 = arith.constant 0 : index
    %c0_2 = arith.constant 0 : index
    %1 = vector.load %arg2[%c0_1, %c0_2] : memref<128x128xf32, #tpu.memory_space<vmem>>, vector<128x128xf32>
    %cst = arith.constant dense<0.000000e+00> : vector<16x128xf32>
    %2 = tpu.matmul %0, %1, %cst {dimension_numbers = #tpu.dot_dimension_numbers<[1], [0], [0], [1], [0, 0, 1, 1], [], []>} : vector<16x128xf32>, vector<128x128xf32>, vector<16x128xf32> -> vector<16x128xf32>
    %c0_3 = arith.constant 0 : index
    %c0_4 = arith.constant 0 : index
    %3 = vector.load %arg3[%c0_3, %c0_4] : memref<1x128xf32, #tpu.memory_space<vmem>>, vector<1x128xf32>
    %4 = vector.broadcast %3 : vector<1x128xf32> to vector<16x128xf32>
    %5 = arith.addf %2, %4 : vector<16x128xf32>
    %c0_5 = arith.constant 0 : index
    %c0_6 = arith.constant 0 : index
    %6 = vector.load %arg4[%c0_5, %c0_6] : memref<16x128xf32, #tpu.memory_space<vmem>>, vector<16x128xf32>
    tpu.vector_store %arg4[%c0_5, %c0_6], %5 {strides = array<i32>} : memref<16x128xf32, #tpu.memory_space<vmem>>, vector<16x128xf32>,
    return
  }
  func.func @transform_0(%arg0: i32) -> (i32, i32) {
    %c0_i32 = arith.constant 0 : i32
    %c0_i32_0 = arith.constant 0 : i32
    return %arg0, %c0_i32 : i32, i32
  }
  func.func @transform_1(%arg0: i32) -> (i32, i32) {
    %c0_i32 = arith.constant 0 : i32
    %c0_i32_0 = arith.constant 0 : i32
    %c0_i32_1 = arith.constant 0 : i32
    return %c0_i32, %c0_i32_0 : i32, i32
  }
  func.func @transform_2(%arg0: i32) -> (i32, i32) {
    %c0_i32 = arith.constant 0 : i32
    %c0_i32_0 = arith.constant 0 : i32
    %c0_i32_1 = arith.constant 0 : i32
    return %c0_i32, %c0_i32_0 : i32, i32
  }
  func.func @transform_3(%arg0: i32) -> (i32, i32) {
    %c0_i32 = arith.constant 0 : i32
    %c0_i32_0 = arith.constant 0 : i32
    return %arg0, %c0_i32 : i32, i32
  }
}

</mosaic_0001>

<bundles_post_ra>
// kernel: patch_embed.2
= control target key start
LH: loop header
LB: loop body
LE: loop exit
PB: predicated region body
PF: predicated region fallthrough
CT: control target
= control target key end

     0   :  { %s628_s0 = inlined_call_operand.vmem [shape: f32[128,128], index: 0, kind: input, shape index: {}]   ;;  %s629_s1 = inlined_call_operand.vmem [shape: f32[1,128], index: 1, kind: input, shape index: {}]   ;;  %s630_s2 = inlined_call_operand.vmem [shape: f32[32,64], index: 2, kind: input, shape index: {}]   ;;  %s631_s3 = inlined_call_operand.<no memory space> [shape: f32[], index: 3, kind: input, shape index: {}]   ;;  %s632_s4 = inlined_call_operand.hbm [shape: f32[32,128], index: 4, kind: output, shape index: {}]  }
   0x1   :  { %v9_v0 = vstv %s631_s3 }
   0x2   :  { %10 = vsyncpa [#allocation8], 0 }
   0x3   :  { %12 = vsyncpa [#allocation8 + $0x1], 0  ;;  %s485_s17 = smov 0   ;;  %s487_s18 = smov 0  }
   0x4   :  { %s489_s19 = smov 0   ;;  %s491_s20 = smov 0  }
   0x5 LB: > { %s506_s21 = sadd.s32 4294967295, %s453_s20   ;;  %s319_s22 = sadd.s32 4294967294, %s453_s20   ;;  %s453_s20 = sphi %s491_s20, %s638_s20   ;;  %s449_s19 = sphi %s489_s19, %s637_s19   ;;  %s445_s18 = sphi %s487_s18, %s636_s18   ;;  %s441_s17 = sphi %s485_s17, %s635_s17  }
   0x6   : > { %s510_s23 = sadd.s32 1, %s453_s20   ;;  %s93_s24 = sadd.s32 1, %s449_s19 }
   0x7   : > { %s90_s25 = ssub.s32 %s453_s20, %s510_s23  ;;  %p103_p0 = scmp.ne.s32.totalorder %s449_s19, %s445_s18 }
   0x8   : > { %p91_p1 = scmp.eq.s32.totalorder %s90_s25, 0  ;;  %p104_p2 = scmp.eq.s32.totalorder %s506_s21, 1 }
   0x9   : > { %p109_p3 = scmp.ne.s32.totalorder %s445_s18, %s441_s17  ;;  %p110_p4 = scmp.eq.s32.totalorder %s319_s22, 1 }
   0xa   : > { %s521_s26 = scalar_select %p91_p1, %s449_s19, %s93_s24  }
   0xb   : > { %p523_p5 = por %p104_p2, %p103_p0  ;;  %p527_p6 = por %p110_p4, %p109_p3 }
   0xc   : > { %p322_p7 = scmp.ge.s32.totalorder %s453_s20, 1  ;;  %p143_p8 = scmp.lt.s32.totalorder %s453_s20, 3 }
   0xe   : > { %p144_p9 = pnand %p322_p7, %p143_p8 }
   0xf   : > { %s324_s15 = sshll.u32 (!%p144_p9), %s506_s21, 1  ;;  %s164_s10 = sand.u32 (!%p144_p9), 1, %s445_s18  }
  0x10   : > { %147 = sbr.rel (%p144_p9) target bundleno = 186 (0xba), region = 32  ;;  %p168_p10 = scmp.lt.s32.totalorder (!%p144_p9), %s324_s15, 3 }
  0x11   : > { %s332_s12 = sshll.u32 (!%p144_p9), %s506_s21, 4  ;;  %s242_s21 = scalar_lea.sflag (!%p144_p9), [#allocation8], %s164_s10 }
  0x12   : > { %s253_s16 = scalar_lea.hbm (!%p144_p9), %s632_s4, %s332_s12  ;;  %s411_s8 = scalar_lea.hbm (!%p144_p9), %s632_s4, 32 }
  0x13   : > { %s256_s29 = sshll.u32 (!%p144_p9), %s253_s16, 4  ;;  %s257_s29 = int_to_ptr.hbm [resolvable:$true] %s256_s29 }
  0x14   : > { %s405_s30 = sshra.s32 (!%p144_p9), %s257_s29, 4  ;;  %s406_s30 = int_to_ptr.hbm [resolvable:$true] %s405_s30 }
  0x15   : > { %v211_v1 = vld [vmem:[%s628_s0 + $0x78] sm:$0xff]  ;;  %v210_v2 = vld [vmem:[%s628_s0 + $0x70] sm:$0xff]  ;;  %v209_v3 = vld [vmem:[%s628_s0 + $0x68] sm:$0xff]  ;;  %s640_s15 = smov (!%p168_p10, %s324_s15), 3  ;;  %v175_v12 = vlaneseq  ;;  %s407_s5 = scalar_lea.hbm %s406_s30, 16 }
  0x16   : > { %216 = vmatpush.msra.mxu0 %v211_v1  ;;  %333 = vmatpush.msra.mxu1 %v211_v1  ;;  %v208_v4 = vld [vmem:[%s628_s0 + $0x60] sm:$0xff]  ;;  %v207_v5 = vld [vmem:[%s628_s0 + $0x58] sm:$0xff]  ;;  %v206_v6 = vld [vmem:[%s628_s0 + $0x50] sm:$0xff]  ;;  %s325_s11 = sshll.u32 %s640_s15, 3  ;;  %p408_p11 = scmp.ne.s32.totalorder %s406_s30, %s407_s5 }
  0x17   : > { %v205_v7 = vld [vmem:[%s628_s0 + $0x48] sm:$0xff]  ;;  %v204_v8 = vld [vmem:[%s628_s0 + $0x40] sm:$0xff]  ;;  %v203_v9 = vld [vmem:[%s628_s0 + $0x38] sm:$0xff]  ;;  %v176_v15 = vand.u32 127, %v175_v12  ;;  %s171_s22 = scalar_lea.vmem %s630_s2, %s325_s11  ;;  %s323_s11 = sshll.u32 %s164_s10, 4 }
  0x18   : > { %217 = vmatpush.msra.mxu0 %v210_v2  ;;  %334 = vmatpush.msra.mxu1 %v210_v2  ;;  %v202_v10 = vld [vmem:[%s628_s0 + $0x30] sm:$0xff]  ;;  %v201_v11 = vld [vmem:[%s628_s0 + $0x28] sm:$0xff]  ;;  %v200_v13 = vld [vmem:[%s628_s0 + $0x20] sm:$0xff]  ;;  %s166_s25 = scalar_lea.vmem [#allocation7], %s323_s11  ;;  %p409_p12 = pnand %p408_p11, %p523_p5 }
  0x19   : > { %v199_v14 = vld [vmem:[%s628_s0 + $0x18] sm:$0xff]  ;;  %v198_v16 = vld [vmem:[%s628_s0 + $0x10] sm:$0xff]  ;;  %v197_v17 = vld [vmem:[%s628_s0 + $0x8] sm:$0xff]  ;;  %vm178_vm0 = vcmp.lt.s32.totalorder %v176_v15, 64  ;;  %s254_s15 = sshll.u32 %s166_s25, 4  ;;  %p412_p0 = scmp.lt.s32.totalorder %s406_s30, %s632_s4  ;;  %s255_s15 = int_to_ptr.vmem [resolvable:$true] %s254_s15 }
  0x1a   : > { %218 = vmatpush.msra.mxu0 %v209_v3  ;;  %335 = vmatpush.msra.mxu1 %v209_v3  ;;  %v174_v18 = vld [vmem:[%s171_s22] sm:$0xff]  ;;  %v326_v19 = vld [vmem:[%s171_s22 + $0x8] sm:$0xff]  ;;  %p410_p13 = pneg %p409_p12  ;;  %p413_p1 = scmp.lt.s32.totalorder %s411_s8, %s407_s5 }
  0x1b   : > { %v196_v20 = vld [vmem:[%s628_s0] sm:$0xff]  ;;  %v179_v21 = vsel %vm178_vm0, %v174_v18, %v9_v0  ;;  %v189_v22 = vsel %vm178_vm0, %v326_v19, %v9_v0 }
  0x1c   : > { %219 = vmatpush.msra.mxu0 %v208_v4  ;;  %336 = vmatpush.msra.mxu1 %v208_v4  ;;  %v390_v23 = vld [vmem:[%s629_s1] ss:$0 sm:$0xff]  ;;  %p414_p2 = por %p413_p1, %p412_p0 }
  0x1e   : > { %220 = vmatpush.msra.mxu0 %v207_v5  ;;  %337 = vmatpush.msra.mxu1 %v207_v5  ;;  %p415_p3 = pnand %p414_p2, %p410_p13 }
  0x20   : > { %221 = vmatpush.msra.mxu0 %v206_v6  ;;  %338 = vmatpush.msra.mxu1 %v206_v6 }
  0x22   : > { %222 = vmatpush.msra.mxu0 %v205_v7  ;;  %339 = vmatpush.msra.mxu1 %v205_v7 }
  0x24   : > { %223 = vmatpush.msra.mxu0 %v204_v8  ;;  %340 = vmatpush.msra.mxu1 %v204_v8 }
  0x26   : > { %224 = vmatpush.msra.mxu0 %v203_v9  ;;  %341 = vmatpush.msra.mxu1 %v203_v9 }
  0x28   : > { %225 = vmatpush.msra.mxu0 %v202_v10  ;;  %342 = vmatpush.msra.mxu1 %v202_v10 }
  0x2a   : > { %226 = vmatpush.msra.mxu0 %v201_v11  ;;  %343 = vmatpush.msra.mxu1 %v201_v11 }
  0x2c   : > { %227 = vmatpush.msra.mxu0 %v200_v13  ;;  %344 = vmatpush.msra.mxu1 %v200_v13 }
  0x2e   : > { %228 = vmatpush.msra.mxu0 %v199_v14  ;;  %345 = vmatpush.msra.mxu1 %v199_v14 }
  0x30   : > { %229 = vmatpush.msra.mxu0 %v198_v16  ;;  %346 = vmatpush.msra.mxu1 %v198_v16 }
  0x32   : > { %230 = vmatpush.msra.mxu0 %v197_v17  ;;  %347 = vmatpush.msra.mxu1 %v197_v17 }
  0x34   : > { %231 = vmatpush.msra.mxu0 %v196_v20  ;;  %348 = vmatpush.msra.mxu1 %v196_v20 }
  0x35   : > { %232 = vmatmul.f32.vlgmr.msra.gmra.mxu0 %v179_v21  ;;  %235 = vmatmul.f32.vlgmr.msra.gmra.mxu1 %v189_v22 }
  0xb2   : > { %v233_v24 = vpop.f32.mrf.mxu0  ;;  %v236_v25 = vpop.f32.mrf.mxu1 }
  0xb3   : > { %v234_v26 = vadd.f32 %v390_v23, %v233_v24  ;;  %v237_v27 = vadd.f32 %v390_v23, %v236_v25 }
  0xb5   : > { %239 = vst [vmem:[%s166_s25] sm:$0xff] %v234_v26 }
  0xb6   : > { %240 = vst [vmem:[%s166_s25 + $0x8] sm:$0xff] %v237_v27 }
  0xb7   : > { %418 = shalt.err (!%p415_p3)
}
  0xb8   : > { %s455_s10 = smov 128   ;;  %s456_s12 = smov 8  }
  0xb9   : > { %349 = dma.vmem_to_hbm [thread:$0]  (%p523_p5), %s255_s15, 256, %s257_s29, %s242_s21, %s455_s10, %s455_s10, %s456_s12  }
  0xba PF: > { %p355_p4 = scmp.ge.s32.totalorder %s453_s20, 2  ;;  %s271_s13 = sand.u32 1, %s441_s17  }
  0xbb   : > { %s272_s14 = scalar_lea.sflag [#allocation8], %s271_s13 }
  0xbc   : > { %p352_p7 = pnand %p355_p4, %p527_p6 }
  0xbe   : > { %p353_p8 = pneg %p352_p7 }
  0xc0   : > { %436 = dma.done.wait (%p353_p8), %s272_s14, 256  }
  0xc1   : > { %438 = vsyncadd (%p353_p8), %s272_s14, 4294967040  ;;  %p15_p9 = scmp.ge.s32.totalorder %s510_s23, 4   ;;  %s635_s17 = smov %s445_s18 }
  0xc2   : > { %s636_s18 = smov %s449_s19  ;;  %s637_s19 = smov %s521_s26 }
  0xc3   : > { %s638_s20 = smov %s510_s23  ;;  %17 = sbr.rel (!%p15_p9) target bundleno = 5 (0x5), region = 69 }
  0xc8   :  { %278 = vsyncpa [#allocation8], 1 }
  0xc9   :  { %280 = vsyncpa [#allocation8 + $0x1], 1 }

</bundles_post_ra>
